<compile_context>
chip_gen: v7x
topology: tpu7x:2x2x1
jax: 0.10.0
libtpu: 0.0.40
codegen_flags: <defaults>
</compile_context>

<pallas_src>
import functools

import jax
import jax.numpy as jnp
from jax import lax
from jax.experimental import pallas as pl
from jax.experimental.pallas import tpu as pltpu

# ---- module hyper-parameters (from the PyTorch source) ----
BLOCK_SIZE = 8            # block_size (sequence length T)
N_EMBD = 32               # n_embd
HEAD_SIZE = N_EMBD        # Head(n_embd)
VOCAB_SIZE = 65           # len(chars) (tiny-shakespeare style charset)

LANE = 128
VOCAB_PAD = ((VOCAB_SIZE + LANE - 1) // LANE) * LANE     # 128


def _round_up(x, m):
    return ((x + m - 1) // m) * m


def _bigram_kernel(idx_ref, pos_ref, tok_ref, wqkv_ref, wlt_ref, bl_ref, out_ref, *, seq_len):
    """One block of sequences, flattened to rows.

    idx_ref : (N, 1)   int32  token ids, N = Bb * T
    pos_ref : (N, C)   f32    position embeddings, tiled per sequence
    tok_ref : (Vp, C)  f32    token-embedding table, vocab padded to 128
    wqkv_ref: (C, 3H)  f32    [Wq^T | Wk^T | Wv^T]
    wlt_ref : (C, Vp)  f32    lm_head weight^T, vocab padded to 128
    bl_ref  : (1, Vp)  f32    lm_head bias, vocab padded
    out_ref : (N, Vp)  f32    logits (lane-dense, padded vocab)
    """
    n_rows = idx_ref.shape[0]
    t = seq_len
    bb = n_rows // t
    vp, c = tok_ref.shape
    h = HEAD_SIZE

    # --- fused token-embedding gather: one-hot (N, Vp) @ table (Vp, C) on the MXU ---
    ids = idx_ref[...]                                               # (N, 1) int32
    vocab_iota = lax.broadcasted_iota(jnp.int32, (n_rows, vp), 1)    # (N, Vp)
    one_hot = (vocab_iota == ids).astype(jnp.float32)
    tok_emb = jnp.dot(one_hot, tok_ref[...], preferred_element_type=jnp.float32)  # (N, C)

    x = tok_emb + pos_ref[...]                                       # (N, C)

    # --- fused q/k/v projection: single (N, C) @ (C, 3H) matmul, then static slices ---
    qkv = jnp.dot(x, wqkv_ref[...], preferred_element_type=jnp.float32)   # (N, 3H)
    qkv = qkv.reshape(bb, t, 3 * h)                                  # T == 8 == sublane tile
    q = qkv[:, :, 0 * h:1 * h]
    k = qkv[:, :, 1 * h:2 * h]
    v = qkv[:, :, 2 * h:3 * h]

    # --- single-head causal attention (per-sequence T x T) ---
    scale = jnp.float32(c) ** -0.5          # C ** -0.5, exactly as in the reference module
    wei = jnp.einsum("bqc,bkc->bqk", q, k, preferred_element_type=jnp.float32) * scale
    row = lax.broadcasted_iota(jnp.int32, (bb, t, t), 1)
    col = lax.broadcasted_iota(jnp.int32, (bb, t, t), 2)
    wei = jnp.where(col <= row, wei, jnp.float32(-1e30))    # large-finite: NaN-safe vs -inf
    wei = wei - jnp.max(wei, axis=-1, keepdims=True)
    p = jnp.exp(wei)
    p = p * pl.reciprocal(jnp.sum(p, axis=-1, keepdims=True), approx=True)
    attn = jnp.einsum("bqk,bkc->bqc", p, v, preferred_element_type=jnp.float32)  # (Bb, T, H)

    # --- lm_head on flattened rows; padded-to-128 output => unmasked lane-dense stores ---
    attn2 = attn.reshape(n_rows, h)
    logits = jnp.dot(attn2, wlt_ref[...], preferred_element_type=jnp.float32) + bl_ref[...]
    out_ref[...] = logits


def bigram_forward(idx, params):
    """idx: (B, T) int tokens.  Returns logits (B, T, VOCAB_SIZE) f32 (targets=None path)."""
    B, T = idx.shape
    C, H, V, Vp = N_EMBD, HEAD_SIZE, VOCAB_SIZE, VOCAB_PAD

    # --- sequences per grid step ---
    if B <= 16:
        seq_block = B                                     # single step for tiny batches
    else:
        # >=2 grid steps (so v7x can use both TensorCores), capped at 256 sequences/step
        seq_block = min(256, _round_up(-(-B // 2), 8))
    n_steps = -(-B // seq_block)
    b_pad = n_steps * seq_block

    # --- one-time wrapper-side prep (padding, gathers-free layout, pre-transposed weights) ---
    idx_p = jnp.zeros((b_pad, T), jnp.int32).at[:B].set(idx.astype(jnp.int32))
    idx_flat = idx_p.reshape(b_pad * T, 1)

    tok_p = jnp.zeros((Vp, C), jnp.float32).at[:V].set(params["tok_emb"])
    pos_tiled = jnp.tile(params["pos_emb"][:T], (seq_block, 1))            # (Bb*T, C)

    wqkv_t = jnp.concatenate(
        [params["wq"].T, params["wk"].T, params["wv"].T], axis=1)          # (C, 3H)
    wlt_p = jnp.zeros((C, Vp), jnp.float32).at[:, :V].set(params["wl"].T)  # (C, Vp)
    bl_p = jnp.zeros((1, Vp), jnp.float32).at[:, :V].set(params["bl"][None, :])

    n_block = seq_block * T
    n_total = b_pad * T

    grid_spec = pl.GridSpec(
        grid=(n_steps,),
        in_specs=[
            pl.BlockSpec((n_block, 1), lambda b: (b, 0)),      # token ids
            pl.BlockSpec((n_block, C), lambda b: (0, 0)),      # tiled pos emb (shared)
            pl.BlockSpec((Vp, C), lambda b: (0, 0)),           # token table (shared)
            pl.BlockSpec((C, 3 * H), lambda b: (0, 0)),        # fused Wqkv^T (shared)
            pl.BlockSpec((C, Vp), lambda b: (0, 0)),           # Wl^T padded (shared)
            pl.BlockSpec((1, Vp), lambda b: (0, 0)),           # bias padded (shared)
        ],
        out_specs=pl.BlockSpec((n_block, Vp), lambda b: (b, 0)),
    )

    flops = 2 * n_total * C * (Vp + 3 * H + Vp) + 4 * b_pad * T * T * H
    bytes_accessed = 4 * (idx_flat.size + pos_tiled.size + tok_p.size +
                          wqkv_t.size + wlt_p.size + bl_p.size + n_total * Vp)
    cost = pl.CostEstimate(flops=flops,
                           transcendentals=n_total * (T + 1),
                           bytes_accessed=bytes_accessed)

    kernel = functools.partial(_bigram_kernel, seq_len=T)
    out = pl.pallas_call(
        kernel,
        out_shape=jax.ShapeDtypeStruct((n_total, Vp), jnp.float32),
        grid_spec=grid_spec,
        compiler_params=pltpu.CompilerParams(dimension_semantics=("parallel",)),
        cost_estimate=cost,
    )(idx_flat, pos_tiled, tok_p, wqkv_t, wlt_p, bl_p)

    return out.reshape(b_pad, T, Vp)[:B, :, :V]


def _reference_forward(idx, params):
    """Pure-JAX reference mirroring the PyTorch forward (targets=None)."""
    tok_emb = jnp.take(params["tok_emb"], idx, axis=0)
    pos_emb = params["pos_emb"][: idx.shape[1]]
    x = tok_emb + pos_emb                                  # (B, T, C)
    k = x @ params["wk"].T
    q = x @ params["wq"].T
    v = x @ params["wv"].T
    wei = jnp.einsum("btc,bsc->bts", q, k) * (x.shape[-1] ** -0.5)
    T = x.shape[1]
    mask = jnp.tril(jnp.ones((T, T), dtype=bool))
    wei = jnp.where(mask, wei, -jnp.inf)
    wei = jax.nn.softmax(wei, axis=-1)
    out = jnp.einsum("bts,bsc->btc", wei, v)
    return out @ params["wl"].T + params["bl"]


def init_params(key):
    ks = jax.random.split(key, 6)
    scale = 0.02
    return {
        "tok_emb": scale * jax.random.normal(ks[0], (VOCAB_SIZE, N_EMBD), jnp.float32),
        "pos_emb": scale * jax.random.normal(ks[1], (BLOCK_SIZE, N_EMBD), jnp.float32),
        "wk": scale * jax.random.normal(ks[2], (HEAD_SIZE, N_EMBD), jnp.float32),
        "wq": scale * jax.random.normal(ks[3], (HEAD_SIZE, N_EMBD), jnp.float32),
        "wv": scale * jax.random.normal(ks[4], (HEAD_SIZE, N_EMBD), jnp.float32),
        "wl": scale * jax.random.normal(ks[5], (VOCAB_SIZE, N_EMBD), jnp.float32),
        "bl": jnp.zeros((VOCAB_SIZE,), jnp.float32),
    }


if __name__ == "__main__":
    key = jax.random.PRNGKey(0)
    params = init_params(key)

    # small demo batch (single grid step)
    B, T = 2, BLOCK_SIZE
    idx = jax.random.randint(jax.random.PRNGKey(1), (B, T), 0, VOCAB_SIZE, dtype=jnp.int32)
    logits = jax.block_until_ready(bigram_forward(idx, params))
    ref = _reference_forward(idx, params)
    assert logits.shape == (B, T, VOCAB_SIZE)
    assert jnp.allclose(logits, ref, atol=1e-4, rtol=1e-3), (
        f"mismatch vs reference, max abs err = {jnp.max(jnp.abs(logits - ref))}")

    # larger batch exercises batch padding + a multi-step grid (both v7x TensorCores)
    B2 = 24
    idx2 = jax.random.randint(jax.random.PRNGKey(2), (B2, T), 0, VOCAB_SIZE, dtype=jnp.int32)
    logits2 = jax.block_until_ready(bigram_forward(idx2, params))
    ref2 = _reference_forward(idx2, params)
    assert jnp.allclose(logits2, ref2, atol=1e-4, rtol=1e-3), (
        f"mismatch vs reference (B=24), max abs err = {jnp.max(jnp.abs(logits2 - ref2))}")

    print("KERNEL_OK")
</pallas_src>

<mosaic_0001>
module attributes {stable_mosaic.version = 11 : i64} {
  func.func @_bigram_kernel(%arg0: i32, %arg1: memref<16x1xi32, #tpu.memory_space<vmem>>, %arg2: memref<16x32xf32, #tpu.memory_space<vmem>>, %arg3: memref<128x32xf32, #tpu.memory_space<vmem>>, %arg4: memref<32x96xf32, #tpu.memory_space<vmem>>, %arg5: memref<32x128xf32, #tpu.memory_space<vmem>>, %arg6: memref<1x128xf32, #tpu.memory_space<vmem>>, %arg7: memref<16x128xf32, #tpu.memory_space<vmem>>) attributes {dimension_semantics = [#tpu.dimension_semantics<parallel>], iteration_bounds = array<i64: 1>, scalar_prefetch = 0 : i64, scratch_operands = 0 : i64, tpu.core_type = #tpu.core_type<tc>, window_params = [{transform_indices = @transform_0, window_bounds = array<i64: 16, 1>}, {pipeline_mode = #tpu.pipeline_mode<synchronous>, transform_indices = @transform_1, window_bounds = array<i64: 16, 32>}, {pipeline_mode = #tpu.pipeline_mode<synchronous>, transform_indices = @transform_2, window_bounds = array<i64: 128, 32>}, {pipeline_mode = #tpu.pipeline_mode<synchronous>, transform_indices = @transform_3, window_bounds = array<i64: 32, 96>}, {pipeline_mode = #tpu.pipeline_mode<synchronous>, transform_indices = @transform_4, window_bounds = array<i64: 32, 128>}, {pipeline_mode = #tpu.pipeline_mode<synchronous>, transform_indices = @transform_5, window_bounds = array<i64: 1, 128>}, {transform_indices = @transform_6, window_bounds = array<i64: 16, 128>}]} {
    %c0 = arith.constant 0 : index
    %c0_0 = arith.constant 0 : index
    %0 = vector.load %arg1[%c0, %c0_0] : memref<16x1xi32, #tpu.memory_space<vmem>>, vector<16x1xi32>
    %1 = tpu.iota {dimensions = array<i32: 1>} : vector<16x128xi32>
    %2 = vector.broadcast %0 : vector<16x1xi32> to vector<16x128xi32>
    %3 = arith.cmpi eq, %1, %2 : vector<16x128xi32>
    %4 = arith.extui %3 : vector<16x128xi1> to vector<16x128xi32>
    %5 = arith.sitofp %4 : vector<16x128xi32> to vector<16x128xf32>
    %c0_1 = arith.constant 0 : index
    %c0_2 = arith.constant 0 : index
    %6 = vector.load %arg3[%c0_1, %c0_2] : memref<128x32xf32, #tpu.memory_space<vmem>>, vector<128x32xf32>
    %cst = arith.constant dense<0.000000e+00> : vector<16x32xf32>
    %7 = tpu.matmul %5, %6, %cst {dimension_numbers = #tpu.dot_dimension_numbers<[1], [0], [0], [1], [0, 0, 1, 1], [], []>} : vector<16x128xf32>, vector<128x32xf32>, vector<16x32xf32> -> vector<16x32xf32>
    %c0_3 = arith.constant 0 : index
    %c0_4 = arith.constant 0 : index
    %8 = vector.load %arg2[%c0_3, %c0_4] : memref<16x32xf32, #tpu.memory_space<vmem>>, vector<16x32xf32>
    %9 = arith.addf %7, %8 : vector<16x32xf32>
    %c0_5 = arith.constant 0 : index
    %c0_6 = arith.constant 0 : index
    %10 = vector.load %arg4[%c0_5, %c0_6] : memref<32x96xf32, #tpu.memory_space<vmem>>, vector<32x96xf32>
    %cst_7 = arith.constant dense<0.000000e+00> : vector<16x96xf32>
    %11 = tpu.matmul %9, %10, %cst_7 {dimension_numbers = #tpu.dot_dimension_numbers<[1], [0], [0], [1], [0, 0, 1, 1], [], []>} : vector<16x32xf32>, vector<32x96xf32>, vector<16x96xf32> -> vector<16x96xf32>
    %12 = vector.shape_cast %11 : vector<16x96xf32> to vector<2x8x96xf32>
    %13 = vector.extract_strided_slice %12 {offsets = [0, 0, 0], sizes = [2, 8, 32], strides = [1, 1, 1]} : vector<2x8x96xf32> to vector<2x8x32xf32>
    %14 = vector.extract_strided_slice %12 {offsets = [0, 0, 32], sizes = [2, 8, 32], strides = [1, 1, 1]} : vector<2x8x96xf32> to vector<2x8x32xf32>
    %15 = vector.extract_strided_slice %12 {offsets = [0, 0, 64], sizes = [2, 8, 32], strides = [1, 1, 1]} : vector<2x8x96xf32> to vector<2x8x32xf32>
    %cst_8 = arith.constant 3.200000e+01 : f32
    %cst_9 = arith.constant -5.000000e-01 : f32
    %16 = math.powf %cst_8, %cst_9 : f32
    "tpu.trace_start"() <{level = 10 : i32, message = "bqc,bkc->bqk"}> : () -> ()
    %cst_10 = arith.constant dense<0.000000e+00> : vector<2x8x8xf32>
    %17 = tpu.matmul %13, %14, %cst_10 {dimension_numbers = #tpu.dot_dimension_numbers<[2], [2], [1], [1], [0, 0, 0, 1, 1, 1], [0], [0]>} : vector<2x8x32xf32>, vector<2x8x32xf32>, vector<2x8x8xf32> -> vector<2x8x8xf32>
    "tpu.trace_stop"() : () -> ()
    %18 = vector.broadcast %16 : f32 to vector<2x8x8xf32>
    %19 = arith.mulf %17, %18 : vector<2x8x8xf32>
    %20 = tpu.iota {dimensions = array<i32: 1>} : vector<2x8x8xi32>
    %21 = tpu.iota {dimensions = array<i32: 2>} : vector<2x8x8xi32>
    %22 = arith.cmpi sle, %21, %20 : vector<2x8x8xi32>
    %cst_11 = arith.constant -1.000000e+30 : f32
    %23 = vector.broadcast %cst_11 : f32 to vector<2x8x8xf32>
    %24 = arith.select %22, %19, %23 : vector<2x8x8xi1>, vector<2x8x8xf32>
    %cst_12 = arith.constant dense<0xFF800000> : vector<2x8xf32>
    %25 = vector.multi_reduction <maximumf>, %24, %cst_12 [2] : vector<2x8x8xf32> to vector<2x8xf32>
    %26 = vector.shape_cast %25 : vector<2x8xf32> to vector<2x8x1xf32>
    %27 = vector.broadcast %26 : vector<2x8x1xf32> to vector<2x8x8xf32>
    %28 = arith.subf %24, %27 : vector<2x8x8xf32>
    %29 = math.exp %28 : vector<2x8x8xf32>
    %cst_13 = arith.constant dense<0.000000e+00> : vector<2x8xf32>
    %30 = vector.multi_reduction <add>, %29, %cst_13 [2] : vector<2x8x8xf32> to vector<2x8xf32>
    %31 = vector.shape_cast %30 : vector<2x8xf32> to vector<2x8x1xf32>
    %32 = tpu.reciprocal %31 {approx = true} : vector<2x8x1xf32> -> vector<2x8x1xf32>
    %33 = vector.broadcast %32 : vector<2x8x1xf32> to vector<2x8x8xf32>
    %34 = arith.mulf %29, %33 : vector<2x8x8xf32>
    "tpu.trace_start"() <{level = 10 : i32, message = "bqk,bkc->bqc"}> : () -> ()
    %cst_14 = arith.constant dense<0.000000e+00> : vector<2x8x32xf32>
    %35 = tpu.matmul %34, %15, %cst_14 {dimension_numbers = #tpu.dot_dimension_numbers<[2], [1], [1], [2], [0, 0, 0, 1, 1, 2], [0], [0]>} : vector<2x8x8xf32>, vector<2x8x32xf32>, vector<2x8x32xf32> -> vector<2x8x32xf32>
    "tpu.trace_stop"() : () -> ()
    %36 = vector.shape_cast %35 : vector<2x8x32xf32> to vector<16x32xf32>
    %c0_15 = arith.constant 0 : index
    %c0_16 = arith.constant 0 : index
    %37 = vector.load %arg5[%c0_15, %c0_16] : memref<32x128xf32, #tpu.memory_space<vmem>>, vector<32x128xf32>
    %cst_17 = arith.constant dense<0.000000e+00> : vector<16x128xf32>
    %38 = tpu.matmul %36, %37, %cst_17 {dimension_numbers = #tpu.dot_dimension_numbers<[1], [0], [0], [1], [0, 0, 1, 1], [], []>} : vector<16x32xf32>, vector<32x128xf32>, vector<16x128xf32> -> vector<16x128xf32>
    %c0_18 = arith.constant 0 : index
    %c0_19 = arith.constant 0 : index
    %39 = vector.load %arg6[%c0_18, %c0_19] : memref<1x128xf32, #tpu.memory_space<vmem>>, vector<1x128xf32>
    %40 = vector.broadcast %39 : vector<1x128xf32> to vector<16x128xf32>
    %41 = arith.addf %38, %40 : vector<16x128xf32>
    %c0_20 = arith.constant 0 : index
    %c0_21 = arith.constant 0 : index
    %42 = vector.load %arg7[%c0_20, %c0_21] : memref<16x128xf32, #tpu.memory_space<vmem>>, vector<16x128xf32>
    tpu.vector_store %arg7[%c0_20, %c0_21], %41 {strides = array<i32>} : memref<16x128xf32, #tpu.memory_space<vmem>>, vector<16x128xf32>,
    return
  }
  func.func @transform_0(%arg0: i32) -> (i32, i32) {
    %c0_i32 = arith.constant 0 : i32
    %c0_i32_0 = arith.constant 0 : i32
    return %arg0, %c0_i32 : i32, i32
  }
  func.func @transform_1(%arg0: i32) -> (i32, i32) {
    %c0_i32 = arith.constant 0 : i32
    %c0_i32_0 = arith.constant 0 : i32
    %c0_i32_1 = arith.constant 0 : i32
    return %c0_i32, %c0_i32_0 : i32, i32
  }
  func.func @transform_2(%arg0: i32) -> (i32, i32) {
    %c0_i32 = arith.constant 0 : i32
    %c0_i32_0 = arith.constant 0 : i32
    %c0_i32_1 = arith.constant 0 : i32
    return %c0_i32, %c0_i32_0 : i32, i32
  }
  func.func @transform_3(%arg0: i32) -> (i32, i32) {
    %c0_i32 = arith.constant 0 : i32
    %c0_i32_0 = arith.constant 0 : i32
    %c0_i32_1 = arith.constant 0 : i32
    return %c0_i32, %c0_i32_0 : i32, i32
  }
  func.func @transform_4(%arg0: i32) -> (i32, i32) {
    %c0_i32 = arith.constant 0 : i32
    %c0_i32_0 = arith.constant 0 : i32
    %c0_i32_1 = arith.constant 0 : i32
    return %c0_i32, %c0_i32_0 : i32, i32
  }
  func.func @transform_5(%arg0: i32) -> (i32, i32) {
    %c0_i32 = arith.constant 0 : i32
    %c0_i32_0 = arith.constant 0 : i32
    %c0_i32_1 = arith.constant 0 : i32
    return %c0_i32, %c0_i32_0 : i32, i32
  }
  func.func @transform_6(%arg0: i32) -> (i32, i32) {
    %c0_i32 = arith.constant 0 : i32
    %c0_i32_0 = arith.constant 0 : i32
    return %arg0, %c0_i32 : i32, i32
  }
}

</mosaic_0001>

<bundles_post_ra>
// kernel: tpu_custom_call.1
= control target key start
LH: loop header
LB: loop body
LE: loop exit
PB: predicated region body
PF: predicated region fallthrough
CT: control target
= control target key end

     0   :  { %v885_v2 = vmov 0   ;;  %s1054_s0 = inlined_call_operand.vmem [shape: s32[16,1], index: 0, kind: input, shape index: {}]   ;;  %s1055_s1 = inlined_call_operand.vmem [shape: f32[16,32], index: 1, kind: input, shape index: {}]   ;;  %s1056_s2 = inlined_call_operand.vmem [shape: f32[128,32], index: 2, kind: input, shape index: {}]   ;;  %s1057_s3 = inlined_call_operand.vmem [shape: f32[32,96], index: 3, kind: input, shape index: {}]   ;;  %s1058_s4 = inlined_call_operand.vmem [shape: f32[32,128], index: 4, kind: input, shape index: {}]   ;;  %s1059_s5 = inlined_call_operand.vmem [shape: f32[1,128], index: 5, kind: input, shape index: {}]   ;;  %s1060_s6 = inlined_call_operand.hbm [shape: f32[16,128], index: 6, kind: output, shape index: {}]  }
   0x1   :  { %v24_v0 = vld [vmem:[%s1054_s0] sm:$0xff]  ;;  %852 = vset.pattern.permute.xlu0 %v885_v2  ;;  %v41_v3 = vld [vmem:[%s1056_s2 + $0x8] sm:$0xff]  ;;  %v42_v4 = vld [vmem:[%s1056_s2 + $0x10] sm:$0xff] }
   0x2   :  { %v40_v1 = vld [vmem:[%s1056_s2] sm:$0xff]  ;;  %v43_v5 = vld [vmem:[%s1056_s2 + $0x18] sm:$0xff]  ;;  %29 = vperm.xlu0 %852, %v24_v0   ;;  %v25_v8 = vld [vmem:[%s1054_s0 + $0x8] sm:$0xff] }
   0x3   :  { %v795_v6 = vpack.c.bf16 %v41_v3, %v40_v1  ;;  %v799_v7 = vpack.c.bf16 %v43_v5, %v42_v4  ;;  %v44_v9 = vld [vmem:[%s1056_s2 + $0x20] sm:$0xff]  ;;  %v45_v10 = vld [vmem:[%s1056_s2 + $0x28] sm:$0xff]  ;;  %v46_v12 = vld [vmem:[%s1056_s2 + $0x30] sm:$0xff] }
   0x4   :  { %v803_v11 = vpack.c.bf16 %v45_v10, %v44_v9 }
   0x5   :  { %796 = vmatprep.subr.bf16.mxu0 %v795_v6 }
   0x6   :  { %798 = vmatpush3.bf16.msra.mxu0 %v795_v6  ;;  %32 = vperm.xlu0 %852, %v25_v8  }
   0x7   :  { %800 = vmatprep.subr.bf16.mxu0 %v799_v7 }
   0x8   :  { %11 = vsyncpa [#allocation3], 0  ;;  %v47_v13 = vld [vmem:[%s1056_s2 + $0x38] sm:$0xff]  ;;  %v133_v14 = vld [vmem:[%s1057_s3] sm:$0xff]  ;;  %v26_v30 = vlaneseq  ;;  %v886_v33 = vmov 1.0   ;;  %vm137_vm2 = vcmask 261120  }
   0x9   :  { %v134_v15 = vld [vmem:[%s1057_s3 + $0x8] sm:$0xff]  ;;  %v807_v17 = vpack.c.bf16 %v47_v13, %v46_v12  ;;  %v48_v18 = vld [vmem:[%s1056_s2 + $0x40] sm:$0xff]  ;;  %v50_v21 = vld [vmem:[%s1056_s2 + $0x50] sm:$0xff]  ;;  %v887_v44 = vmov 0.0   ;;  %vm888_vm3 = vmmov 0   ;;  %vm380_vm5 = vcmask 64512  }
   0xa   :  { %v827_v16 = vpack.c.bf16 %v134_v15, %v133_v14  ;;  %802 = vmatpush3.bf16.msra.mxu0 %v799_v7  ;;  %v49_v19 = vld [vmem:[%s1056_s2 + $0x48] sm:$0xff]  ;;  %v51_v22 = vld [vmem:[%s1056_s2 + $0x58] sm:$0xff]  ;;  %v52_v24 = vld [vmem:[%s1056_s2 + $0x60] sm:$0xff]  ;;  %v27_v31 = vand.u32 127, %v26_v30  ;;  %v376_v49 = vshrl.u32 %v26_v30, 7  ;;  %s891_s28 = smov [#allocation2]  }
   0xb   :  { %804 = vmatprep.subr.bf16.mxu0 %v803_v11  ;;  %v811_v20 = vpack.c.bf16 %v49_v19, %v48_v18  ;;  %v815_v23 = vpack.c.bf16 %v51_v22, %v50_v21  ;;  %v53_v25 = vld [vmem:[%s1056_s2 + $0x68] sm:$0xff]  ;;  %v54_v27 = vld [vmem:[%s1056_s2 + $0x70] sm:$0xff]  ;;  %v55_v28 = vld [vmem:[%s1056_s2 + $0x78] sm:$0xff]  ;;  %s654_s29 = sshll.u32 %s891_s28, 4  ;;  %s655_s29 = int_to_ptr.vmem [resolvable:$true] %s654_s29 }
   0xc   :  { %828 = vmatprep.subr.bf16.mxu1 %v827_v16  ;;  %v819_v26 = vpack.c.bf16 %v53_v25, %v52_v24  ;;  %v823_v29 = vpack.c.bf16 %v55_v28, %v54_v27  ;;  %v135_v35 = vld [vmem:[%s1057_s3 + $0x10] sm:$0xff]  ;;  %v136_v36 = vld [vmem:[%s1057_s3 + $0x18] sm:$0xff]  ;;  %v56_v38 = vld [vmem:[%s1055_s1] sm:$0xff]  ;;  %s889_s3 = smov 96   ;;  %vm377_vm4 = vcmp.le.s32.totalorder %v27_v31, %v376_v49  ;;  %p866_p1 = scmp.lt.s32.totalorder %s655_s29, %s655_s29 }
   0xd   :  { %830 = vmatpush3.bf16.msra.mxu1 %v827_v16  ;;  %v831_v37 = vpack.c.bf16 %v136_v36, %v135_v35  ;;  %v57_v39 = vld [vmem:[%s1055_s1 + $0x8] sm:$0xff]  ;;  %s890_s1 = smov 64   ;;  %v555_v9 = vld [vmem:[%s1058_s4] sm:$0xff]  ;;  %v558_v18 = vld [vmem:[%s1058_s4 + $0x18] sm:$0xff] }
   0xe   :  { %806 = vmatpush3.bf16.msra.mxu0 %v803_v11  ;;  %v556_v10 = vld [vmem:[%s1058_s4 + $0x8] sm:$0xff]  ;;  %v677_v24 = vld [vmem:[%s1059_s5] ss:$0 sm:$0xff] }
   0xf   :  { %808 = vmatprep.subr.bf16.mxu0 %v807_v17  ;;  %832 = vmatprep.subr.bf16.mxu1 %v831_v37  ;;  %v835_v13 = vpack.c.bf16 %v556_v10, %v555_v9 }
  0x11   :  { %834 = vmatpush3.bf16.msra.mxu1 %v831_v37 }
  0x12   :  { %810 = vmatpush3.bf16.msra.mxu0 %v807_v17  ;;  %764 = vmatprep.subr.mxu1 %v887_v44  ;;  %v557_v17 = vld [vmem:[%s1058_s4 + $0x10] sm:$0xff]  ;;  %s861_s4 = scalar_lea.vmem %s655_s29, 256 }
  0x13   :  { %812 = vmatprep.subr.bf16.mxu0 %v811_v20  ;;  %v839_v19 = vpack.c.bf16 %v558_v18, %v557_v17  ;;  %p862_p0 = scmp.ne.s32.totalorder %s655_s29, %s861_s4  ;;  %p867_p2 = scmp.lt.s32.totalorder %s861_s4, %s861_s4 }
  0x15   :  { %p868_p3 = por %p867_p2, %p866_p1 }
  0x16   :  { %814 = vmatpush3.bf16.msra.mxu0 %v811_v20 }
  0x17   :  { %816 = vmatprep.subr.bf16.mxu0 %v815_v23  ;;  %p869_p4 = pnand %p868_p3, %p862_p0 }
  0x1a   :  { %818 = vmatpush3.bf16.msra.mxu0 %v815_v23 }
  0x1b   :  { %820 = vmatprep.subr.bf16.mxu0 %v819_v26 }
  0x1e   :  { %822 = vmatpush3.bf16.msra.mxu0 %v819_v26 }
  0x1f   :  { %824 = vmatprep.subr.bf16.mxu0 %v823_v29 }
  0x22   :  { %826 = vmatpush3.bf16.msra.mxu0 %v823_v29 }
  0x81   :  { %v30_v32 = vpop.permute.xlu0 %29 }
  0x82   :  { %vm34_vm0 = vcmp.eq.s32.totalorder %v27_v31, %v30_v32 }
  0x83   :  { %750 = vmatprep.mubr.msk.f32.mxu0 %vm34_vm0, %v886_v33 }
  0x85   :  { %v33_v34 = vpop.permute.xlu0 %32 }
  0x86   :  { %vm35_vm1 = vcmp.eq.s32.totalorder %v27_v31, %v33_v34 }
  0x87   :  { %751 = vmatmul.mubr.msk.f32.vlgmr.msra.gmra.mrb[0].mxu0 %vm35_vm1, %v886_v33 }
 0x15a   :  { %v752_v40 = vpop.f32.mrb[0].mxu0 }
 0x15b   :  { %v124_v41 = vpop.f32.mrb[1].mxu0  ;;  %v130_v43 = vadd.f32 %v752_v40, %v57_v39 }
 0x15c   :  { %v125_v42 = vadd.f32 %v124_v41, %v56_v38 }
 0x15e   :  { %761 = vmatprep.mubr.msk.f32.mxu1 %vm137_vm2, %v125_v42 }
 0x15f   :  { %762 = vmatmul.mubr.msk.f32.vlgmr.msra.gmra.mrb[0].mxu1 %vm137_vm2, %v130_v43 }
 0x160   :  { %766 = vmatprep.mubr.msk.f32.mxu1 %vm888_vm3, %v887_v44 }
 0x232   :  { %v763_v45 = vpop.f32.mrb[0].mxu1 }
 0x233   :  { %v210_v46 = vpop.f32.mrb[1].mxu1 }
 0x234   :  { %220 = vrot.lane.b32.xlu1 %v210_v46, %s889_s3 }
 0x238   :  { %297 = vrot.lane.b32.xlu1 %v763_v45, %s889_s3 }
 0x2a6   :  { %v221_v47 = vpop.permute.xlu1 %220 }
 0x2a7   :  { %765 = vmatpush3.xpose.msk.msra.mxu1 %vm137_vm2, %v221_v47 }
 0x2a8   :  { %769 = vmatprep.subr.mxu1 %v887_v44 }
 0x2aa   :  { %767 = vmatmul.mubr.msk.f32.vlgmr.msra.gmra.mrb[2].mxu1 %vm137_vm2, %v210_v46  ;;  %v298_v48 = vpop.permute.xlu1 %297 }
 0x2ab   :  { %770 = vmatpush3.xpose.msk.msra.mxu1 %vm137_vm2, %v298_v48  ;;  %771 = vmatprep.mubr.msk.f32.mxu1 %vm888_vm3, %v887_v44 }
 0x2ac   :  { %774 = vmatprep.subr.mxu1 %v887_v44 }
 0x2ae   :  { %772 = vmatmul.mubr.msk.f32.vlgmr.msra.gmra.mrb[4].mxu1 %vm137_vm2, %v763_v45 }
 0x2af   :  { %776 = vmatprep.mubr.msk.f32.mxu1 %vm888_vm3, %v887_v44 }
 0x37d   :  { %v292_v50 = vpop.f32.mrb[2].mxu1 }
 0x37e   :  { %v373_v51 = vmul.f32 0.17677669, %v292_v50  ;;  %v768_v52 = vpop.f32.mrb[3].mxu1 }
 0x380   :  { %v378_v53 = vsel %vm377_vm4, %v373_v51, -1e+30 }
 0x381   :  { %v369_v54 = vpop.f32.mrb[4].mxu1  ;;  %v381_v55 = vsel %vm380_vm5, %v378_v53, -inf }
 0x382   :  { %v374_v56 = vmul.f32 0.17677669, %v369_v54  ;;  %382 = vmax.xlane.f32.xlu0 %v381_v55  ;;  %v773_v57 = vpop.f32.mrb[5].mxu1 }
 0x384   :  { %v379_v58 = vsel %vm377_vm4, %v374_v56, -1e+30 }
 0x385   :  { %v384_v59 = vsel %vm380_vm5, %v379_v58, -inf }
 0x386   :  { %385 = vmax.xlane.f32.xlu1 %v384_v59 }
 0x397   :  { %403 = vrot.lane.b32.xlu1 %v210_v46, %s890_s1 }
 0x40f   :  { %v383_v60 = vpop.xlane.xlu0 %382 }
 0x410   :  { %v387_v61 = vsub.f32 %v378_v53, %v383_v60 }
 0x412   :  { %v389_v62 = vmul.f32 1.442695, %v387_v61 }
 0x413   :  { %v386_v63 = vpop.xlane.xlu1 %385 }
 0x414   :  { %853 = vpow2.f32 %v389_v62  ;;  %v388_v0 = vsub.f32 %v379_v58, %v386_v63 }
 0x416   :  { %v391_v1 = vmul.f32 1.442695, %v388_v0 }
 0x417   :  { %v404_v2 = vpop.permute.xlu1 %403 }
 0x418   :  { %855 = vpow2.f32 %v391_v1  ;;  %775 = vmatpush3.msra.mxu1 %v404_v2 }
 0x419   :  { %779 = vmatprep.subr.mxu1 %v887_v44 }
 0x41e   :  { %v854_v3 = vpop.eup %853 }
 0x41f   :  { %v393_v4 = vsel %vm380_vm5, %v854_v3, 0.0 }
 0x420   :  { %394 = vadd.xlane.f32.xlu0 %v393_v4 }
 0x422   :  { %v856_v5 = vpop.eup %855 }
 0x423   :  { %v396_v6 = vsel %vm380_vm5, %v856_v5, 0.0 }
 0x424   :  { %397 = vadd.xlane.f32.xlu0 %v396_v6 }
 0x43a   :  { %479 = vrot.lane.b32.xlu0 %v763_v45, %s890_s1 }
 0x4ad   :  { %v395_v7 = vpop.xlane.xlu0 %394 }
 0x4ae   :  { %857 = vrcp.f32 %v395_v7 }
 0x4b1   :  { %v398_v8 = vpop.xlane.xlu0 %397 }
 0x4b2   :  { %859 = vrcp.f32 %v398_v8 }
 0x4b5   :  { %v480_v14 = vpop.permute.xlu0 %479 }
 0x4b8   :  { %v858_v11 = vpop.eup %857 }
 0x4b9   :  { %v401_v12 = vmul.f32 %v858_v11, %v854_v3 }
 0x4bb   :  { %777 = vmatmul.mubr.msk.f32.vlgmr.msra.gmra.mrb[6].mxu1 %vm380_vm5, %v401_v12 }
 0x4bc   :  { %v860_v15 = vpop.eup %859  ;;  %780 = vmatpush3.msra.mxu1 %v480_v14  ;;  %781 = vmatprep.mubr.msk.f32.mxu1 %vm888_vm3, %v887_v44 }
 0x4bd   :  { %v402_v16 = vmul.f32 %v860_v15, %v856_v5  ;;  %836 = vmatprep.subr.bf16.mxu1 %v835_v13 }
 0x4bf   :  { %782 = vmatmul.mubr.msk.f32.vlgmr.msra.gmra.mrb[8].mxu1 %vm380_vm5, %v402_v16 }
 0x4c0   :  { %838 = vmatpush3.bf16.msra.mxu1 %v835_v13 }
 0x4c1   :  { %840 = vmatprep.subr.bf16.mxu1 %v839_v19 }
 0x4c4   :  { %842 = vmatpush3.bf16.msra.mxu1 %v839_v19 }
 0x58e   :  { %v475_v20 = vpop.f32.mrb[6].mxu1 }
 0x58f   :  { %v778_v21 = vpop.f32.mrb[7].mxu1  ;;  %792 = vmatprep.mubr.msk.f32.mxu1 %vm137_vm2, %v475_v20 }
 0x592   :  { %v551_v22 = vpop.f32.mrb[8].mxu1 }
 0x593   :  { %v783_v23 = vpop.f32.mrb[9].mxu1  ;;  %793 = vmatmul.mubr.msk.f32.vlgmr.msra.gmra.mrb[10].mxu1 %vm137_vm2, %v551_v22 }
 0x666   :  { %v794_v25 = vpop.f32.mrb[10].mxu1 }
 0x667   :  { %v644_v26 = vadd.f32 %v794_v25, %v677_v24  ;;  %v638_v27 = vpop.f32.mrb[11].mxu1 }
 0x668   :  { %v639_v28 = vadd.f32 %v677_v24, %v638_v27 }
 0x669   :  { %648 = vst [vmem:[#allocation2 + $0x8] sm:$0xff] %v644_v26 }
 0x66a   :  { %647 = vst [vmem:[#allocation2] sm:$0xff] %v639_v28 }
 0x66b   :  { %872 = shalt.err (!%p869_p4)
}
 0x66c   :  { %s873_s5 = scalar_lea.hbm %s1060_s6, 256 }
 0x66d   :  { %p874_p5 = scmp.ne.s32.totalorder %s1060_s6, %s873_s5  ;;  %p877_p6 = scmp.lt.u32.totalorder %s873_s5, %s1060_s6 }
 0x66f   :  { %p879_p7 = pnand %p877_p6, %p874_p5 }
 0x671   :  { %882 = shalt.err (!%p879_p7)
}
 0x672   :  { %s892_s12 = smov 128   ;;  %s893_s13 = smov 8  }
 0x673   :  { %660 = dma.vmem_to_hbm [thread:$0]  %s655_s29, 256, %s1060_s6, [#allocation3], %s892_s12, %s892_s12, %s893_s13  }
 0x674   :  { %883 = dma.done.wait [#allocation3], 256  }
 0x675   :  { %884 = vsyncadd [#allocation3], 4294967040 }
 0x676   :  { %664 = vsyncpa [#allocation3], 1 }

</bundles_post_ra>
